<compile_context>
chip_gen: v6e
topology: v6e:2x2x1
jax: 0.10.0
libtpu: 0.0.40
codegen_flags: <defaults>
</compile_context>

<pallas_src>
import jax
import jax.numpy as jnp
from jax.experimental import pallas as pl
from jax.experimental.pallas import tpu as pltpu

GAMESTATE_SIZE = 32           # checkers board: 32 playable squares
_VMEM_BUDGET_BYTES = 40 << 20  # conservative budget that is safe on v5e/v6e/v7x


def _make_mlp_kernel(num_linears):
    """Kernel for the transposed-domain MLP.

    Ref order: x_ref (in_feat, bt), (w0, b0, ..., w_{L-1}, b_{L-1}), o_ref (1, bt).
    Hidden-layer weights are (out, in); the final layer's weight is an (H, 1)
    column.  ReLU after every linear except the last; tanh on the output.
    """

    def kernel(*refs):
        x_ref = refs[0]
        o_ref = refs[-1]
        wb = refs[1:-1]

        h = x_ref[...]                                  # (in_feat, bt) f32

        # Hidden layers: MXU matmul (f32 accumulation) + bias + ReLU.
        # Bias add / ReLU are kept in f32 (v5e has no bf16 VPU); on the bf16
        # weight path the single cast per layer happens at the next dot.
        for li in range(num_linears - 1):
            w = wb[2 * li][...]                         # (out, in) f32/bf16
            b = wb[2 * li + 1][...]                     # (out, 1)  f32
            acc = jnp.dot(w, h.astype(w.dtype),
                          preferred_element_type=jnp.float32)
            h = jnp.maximum(acc + b, 0.0)

        # Final Linear(H -> 1): VPU multiply + sublane (XLU) reduction.  The
        # result is already lane-dense (batch on lanes), so the store is a
        # full-width vst instead of masked single-lane writes.
        w_last = wb[-2][...]                            # (H, 1) f32
        b_last = wb[-1][...]                            # (1, 1) f32
        out_row = jnp.sum(h * w_last, axis=0, keepdims=True) + b_last
        o_ref[...] = jnp.tanh(out_row).astype(o_ref.dtype)

    return kernel


def _num_tensorcores_per_device():
    """Best-effort: v7x has 2 TensorCores per chip, v5e/v6e have 1."""
    try:
        kind = jax.devices()[0].device_kind.lower()
    except Exception:  # pragma: no cover
        return 1
    return 2 if "v7" in kind else 1


def _largest_divisor_tile(B, max_rows):
    """Largest multiple of 128 that divides B and is <= max_rows (or None)."""
    bt = (min(max_rows, B) // 128) * 128
    while bt >= 128:
        if B % bt == 0:
            return bt
        bt -= 128
    return None


def _pick_batch_tile(B, per_row_bytes, weight_bytes, budget, num_tc):
    """VMEM-aware batch tile.  Single-TC chips: fewest grid steps wins.
    Multi-TC (v7x): prefer an even number of fat steps for core sharding."""
    avail = budget - weight_bytes - (2 << 20)
    max_rows = max(avail // per_row_bytes, 8) if avail > 0 else 8

    if num_tc >= 2 and B >= 512:
        bt = _largest_divisor_tile(B, min(B // num_tc, max_rows))
        if bt is not None and bt >= 256:
            return bt, B // bt

    if B <= max_rows:
        return B, 1                                     # one fat step

    bt = _largest_divisor_tile(B, max_rows)
    if bt is None:
        return B, 1                                     # last resort: one block
    return bt, B // bt


def checkers_v_forward(x, params, *, batch_tile=None, param_dtype=jnp.float32):
    """Run the CheckersVModel forward pass in a single Pallas kernel.

    x:           (B, GAMESTATE_SIZE) float32
    params:      list of (W, b) tuples, W: (in, out), b: (out,)
    batch_tile:  rows per grid step (multiple of 128 when tiling); auto if None
    param_dtype: dtype for the hidden-layer weights (e.g. bf16 on v6e/v7x);
                 accumulation and the final layer stay f32.
    Returns (B, 1) float32.
    """
    B, in_feat = x.shape
    assert in_feat == params[0][0].shape[0]
    assert params[-1][0].shape[1] == 1
    num_linears = len(params)

    widths = [in_feat] + [int(w.shape[1]) for w, _ in params]
    hidden_max = max(widths[:-1])
    param_bytes = 2 if param_dtype == jnp.bfloat16 else 4
    weight_bytes = 0
    for li, (w, b) in enumerate(params):
        wbytes = 4 if li == num_linears - 1 else param_bytes
        weight_bytes += int(w.size) * wbytes + int(b.size) * 4

    # Bytes per batch row that scale with the tile: double-buffered x / out
    # blocks plus ~3 live (hidden_max, bt) f32 activations.
    per_row = 4 * (2 * in_feat + 2 + 3 * hidden_max)

    num_tc = _num_tensorcores_per_device()
    if batch_tile is None:
        batch_tile, grid_steps = _pick_batch_tile(
            B, per_row, weight_bytes, _VMEM_BUDGET_BYTES, num_tc)
    else:
        assert B % batch_tile == 0, "batch_tile must divide the batch size"
        grid_steps = B // batch_tile
        if grid_steps > 1:
            assert batch_tile % 128 == 0, \
                "batch_tile must be a multiple of 128 (batch is the lane dim)"

    footprint = weight_bytes + batch_tile * per_row + (2 << 20)
    vmem_limit = int(min(max(footprint, 16 << 20), 48 << 20))

    # Transposed domain: batch on the lane axis.  (In production the weights
    # would be stored pre-transposed; the .T here is a tiny one-off XLA op.)
    x_t = x.T                                            # (in_feat, B)

    # Whole-array residency for constants: no block_shape => not pipelined,
    # so there is no 2x (double-buffered) copy of the weights in VMEM.
    weight_spec = pl.BlockSpec(memory_space=pltpu.MemorySpace.VMEM)

    in_specs = [pl.BlockSpec((in_feat, batch_tile), lambda i: (0, i))]
    flat_args = []
    for li, (w, b) in enumerate(params):
        if li == num_linears - 1:
            flat_args.append(jnp.asarray(w, jnp.float32))          # (H, 1)
        else:
            flat_args.append(jnp.asarray(w, param_dtype).T)        # (out, in)
        flat_args.append(jnp.asarray(b, jnp.float32).reshape(-1, 1))
        in_specs += [weight_spec, weight_spec]

    out_spec = pl.BlockSpec((1, batch_tile), lambda i: (0, i))      # lane-dense

    flops = 2 * B * sum(int(w.shape[0]) * int(w.shape[1]) for w, _ in params)
    bytes_accessed = 4 * (int(x.size) + B) + weight_bytes
    cost = pl.CostEstimate(flops=int(flops), transcendentals=int(B),
                           bytes_accessed=int(bytes_accessed))

    kernel = _make_mlp_kernel(num_linears)

    def run(dim_sem):
        return pl.pallas_call(
            kernel,
            out_shape=jax.ShapeDtypeStruct((1, B), jnp.float32),
            grid_spec=pltpu.PrefetchScalarGridSpec(
                num_scalar_prefetch=0,
                grid=(grid_steps,),
                in_specs=in_specs,
                out_specs=out_spec,
            ),
            compiler_params=pltpu.CompilerParams(
                dimension_semantics=dim_sem,
                vmem_limit_bytes=vmem_limit),
            cost_estimate=cost,
        )(x_t, *flat_args)

    if grid_steps == 1:
        out_row = run(("arbitrary",))
    elif num_tc >= 2 and grid_steps % num_tc == 0:
        # v7x: shard the batch grid axis across both TensorCores; fall back
        # to plain "parallel" if CORE_PARALLEL is rejected by this toolchain.
        try:
            out_row = run((pltpu.CORE_PARALLEL,))
        except Exception:  # pragma: no cover - hardware/toolchain dependent
            out_row = run(("parallel",))
    else:
        out_row = run(("parallel",))

    return out_row.reshape(B, 1)


def init_params(key, num_hidden_layers, hidden_size):
    """Deterministic init mimicking torch.nn.Linear defaults
    (U[-1/sqrt(fan_in), +1/sqrt(fan_in)]).  W stored as (in, out)."""
    dims = [GAMESTATE_SIZE] + [hidden_size] * (num_hidden_layers + 1) + [1]
    params = []
    for fan_in, fan_out in zip(dims[:-1], dims[1:]):
        key, kw, kb = jax.random.split(key, 3)
        bound = 1.0 / jnp.sqrt(jnp.float32(fan_in))
        w = jax.random.uniform(kw, (fan_in, fan_out), jnp.float32, -bound, bound)
        b = jax.random.uniform(kb, (fan_out,), jnp.float32, -bound, bound)
        params.append((w, b))
    return params


def reference_forward(x, params):
    h = x
    for li, (w, b) in enumerate(params):
        h = h @ w + b
        if li < len(params) - 1:
            h = jnp.maximum(h, 0.0)
    return jnp.tanh(h)


if __name__ == "__main__":
    num_hidden_layers = 2
    hidden_size = 32
    batch = 256

    key = jax.random.PRNGKey(0)
    key, kx = jax.random.split(key)
    x = jax.random.normal(kx, (batch, GAMESTATE_SIZE), dtype=jnp.float32)

    params = init_params(key, num_hidden_layers, hidden_size)
    ref = reference_forward(x, params)

    # Auto tiling: whole batch fits VMEM -> single grid step, lane-dense output.
    out = jax.block_until_ready(checkers_v_forward(x, params))
    assert out.shape == (batch, 1)
    assert jnp.allclose(out, ref, atol=5e-5, rtol=5e-5), "f32 mismatch vs reference"

    # Explicit multi-step grid (exercises the tiled / pipelined path).
    out_tiled = jax.block_until_ready(
        checkers_v_forward(x, params, batch_tile=128))
    assert out_tiled.shape == (batch, 1)
    assert jnp.allclose(out_tiled, ref, atol=5e-5, rtol=5e-5), "tiled mismatch vs reference"

    # bf16 hidden-layer weight path (f32 accumulation and final layer kept f32).
    out_bf16 = jax.block_until_ready(
        checkers_v_forward(x, params, param_dtype=jnp.bfloat16))
    assert out_bf16.shape == (batch, 1)
    assert jnp.allclose(out_bf16, ref, atol=5e-2, rtol=5e-2), "bf16 mismatch vs reference"

    print("KERNEL_OK")
</pallas_src>

<mosaic_0001>
module attributes {stable_mosaic.version = 11 : i64} {
  func.func @kernel(%arg0: i32, %arg1: memref<32x256xf32, #tpu.memory_space<vmem>>, %arg2: memref<32x32xf32, #tpu.memory_space<vmem>>, %arg3: memref<32x1xf32, #tpu.memory_space<vmem>>, %arg4: memref<32x32xf32, #tpu.memory_space<vmem>>, %arg5: memref<32x1xf32, #tpu.memory_space<vmem>>, %arg6: memref<32x32xf32, #tpu.memory_space<vmem>>, %arg7: memref<32x1xf32, #tpu.memory_space<vmem>>, %arg8: memref<32x1xf32, #tpu.memory_space<vmem>>, %arg9: memref<1x1xf32, #tpu.memory_space<vmem>>, %arg10: memref<1x256xf32, #tpu.memory_space<vmem>>) attributes {dimension_semantics = [#tpu.dimension_semantics<arbitrary>], iteration_bounds = array<i64: 1>, scalar_prefetch = 0 : i64, scratch_operands = 0 : i64, tpu.core_type = #tpu.core_type<tc>, window_params = [{transform_indices = @transform_0, window_bounds = array<i64: 32, 256>}, {pipeline_mode = #tpu.pipeline_mode<synchronous>, transform_indices = @transform_1, window_bounds = array<i64: 32, 32>}, {pipeline_mode = #tpu.pipeline_mode<synchronous>, transform_indices = @transform_2, window_bounds = array<i64: 32, 1>}, {pipeline_mode = #tpu.pipeline_mode<synchronous>, transform_indices = @transform_3, window_bounds = array<i64: 32, 32>}, {pipeline_mode = #tpu.pipeline_mode<synchronous>, transform_indices = @transform_4, window_bounds = array<i64: 32, 1>}, {pipeline_mode = #tpu.pipeline_mode<synchronous>, transform_indices = @transform_5, window_bounds = array<i64: 32, 32>}, {pipeline_mode = #tpu.pipeline_mode<synchronous>, transform_indices = @transform_6, window_bounds = array<i64: 32, 1>}, {pipeline_mode = #tpu.pipeline_mode<synchronous>, transform_indices = @transform_7, window_bounds = array<i64: 32, 1>}, {pipeline_mode = #tpu.pipeline_mode<synchronous>, transform_indices = @transform_8, window_bounds = array<i64: 1, 1>}, {transform_indices = @transform_9, window_bounds = array<i64: 1, 256>}]} {
    %c0 = arith.constant 0 : index
    %c0_0 = arith.constant 0 : index
    %0 = vector.load %arg1[%c0, %c0_0] : memref<32x256xf32, #tpu.memory_space<vmem>>, vector<32x256xf32>
    %c0_1 = arith.constant 0 : index
    %c0_2 = arith.constant 0 : index
    %1 = vector.load %arg2[%c0_1, %c0_2] : memref<32x32xf32, #tpu.memory_space<vmem>>, vector<32x32xf32>
    %c0_3 = arith.constant 0 : index
    %c0_4 = arith.constant 0 : index
    %2 = vector.load %arg3[%c0_3, %c0_4] : memref<32x1xf32, #tpu.memory_space<vmem>>, vector<32x1xf32>
    %cst = arith.constant dense<0.000000e+00> : vector<32x256xf32>
    %3 = tpu.matmul %1, %0, %cst {dimension_numbers = #tpu.dot_dimension_numbers<[1], [0], [0], [1], [0, 0, 1, 1], [], []>} : vector<32x32xf32>, vector<32x256xf32>, vector<32x256xf32> -> vector<32x256xf32>
    %4 = vector.broadcast %2 : vector<32x1xf32> to vector<32x256xf32>
    %5 = arith.addf %3, %4 : vector<32x256xf32>
    %cst_5 = arith.constant 0.000000e+00 : f32
    %6 = vector.broadcast %cst_5 : f32 to vector<32x256xf32>
    %7 = arith.maximumf %5, %6 : vector<32x256xf32>
    %c0_6 = arith.constant 0 : index
    %c0_7 = arith.constant 0 : index
    %8 = vector.load %arg4[%c0_6, %c0_7] : memref<32x32xf32, #tpu.memory_space<vmem>>, vector<32x32xf32>
    %c0_8 = arith.constant 0 : index
    %c0_9 = arith.constant 0 : index
    %9 = vector.load %arg5[%c0_8, %c0_9] : memref<32x1xf32, #tpu.memory_space<vmem>>, vector<32x1xf32>
    %cst_10 = arith.constant dense<0.000000e+00> : vector<32x256xf32>
    %10 = tpu.matmul %8, %7, %cst_10 {dimension_numbers = #tpu.dot_dimension_numbers<[1], [0], [0], [1], [0, 0, 1, 1], [], []>} : vector<32x32xf32>, vector<32x256xf32>, vector<32x256xf32> -> vector<32x256xf32>
    %11 = vector.broadcast %9 : vector<32x1xf32> to vector<32x256xf32>
    %12 = arith.addf %10, %11 : vector<32x256xf32>
    %cst_11 = arith.constant 0.000000e+00 : f32
    %13 = vector.broadcast %cst_11 : f32 to vector<32x256xf32>
    %14 = arith.maximumf %12, %13 : vector<32x256xf32>
    %c0_12 = arith.constant 0 : index
    %c0_13 = arith.constant 0 : index
    %15 = vector.load %arg6[%c0_12, %c0_13] : memref<32x32xf32, #tpu.memory_space<vmem>>, vector<32x32xf32>
    %c0_14 = arith.constant 0 : index
    %c0_15 = arith.constant 0 : index
    %16 = vector.load %arg7[%c0_14, %c0_15] : memref<32x1xf32, #tpu.memory_space<vmem>>, vector<32x1xf32>
    %cst_16 = arith.constant dense<0.000000e+00> : vector<32x256xf32>
    %17 = tpu.matmul %15, %14, %cst_16 {dimension_numbers = #tpu.dot_dimension_numbers<[1], [0], [0], [1], [0, 0, 1, 1], [], []>} : vector<32x32xf32>, vector<32x256xf32>, vector<32x256xf32> -> vector<32x256xf32>
    %18 = vector.broadcast %16 : vector<32x1xf32> to vector<32x256xf32>
    %19 = arith.addf %17, %18 : vector<32x256xf32>
    %cst_17 = arith.constant 0.000000e+00 : f32
    %20 = vector.broadcast %cst_17 : f32 to vector<32x256xf32>
    %21 = arith.maximumf %19, %20 : vector<32x256xf32>
    %c0_18 = arith.constant 0 : index
    %c0_19 = arith.constant 0 : index
    %22 = vector.load %arg8[%c0_18, %c0_19] : memref<32x1xf32, #tpu.memory_space<vmem>>, vector<32x1xf32>
    %c0_20 = arith.constant 0 : index
    %c0_21 = arith.constant 0 : index
    %23 = vector.load %arg9[%c0_20, %c0_21] : memref<1x1xf32, #tpu.memory_space<vmem>>, vector<1x1xf32>
    %24 = vector.broadcast %22 : vector<32x1xf32> to vector<32x256xf32>
    %25 = arith.mulf %21, %24 : vector<32x256xf32>
    %cst_22 = arith.constant dense<0.000000e+00> : vector<256xf32>
    %26 = vector.multi_reduction <add>, %25, %cst_22 [0] : vector<32x256xf32> to vector<256xf32>
    %27 = vector.shape_cast %26 : vector<256xf32> to vector<1x256xf32>
    %28 = vector.broadcast %23 : vector<1x1xf32> to vector<1x256xf32>
    %29 = arith.addf %27, %28 : vector<1x256xf32>
    %30 = math.tanh %29 : vector<1x256xf32>
    %c0_23 = arith.constant 0 : index
    %c0_24 = arith.constant 0 : index
    %31 = vector.load %arg10[%c0_23, %c0_24] : memref<1x256xf32, #tpu.memory_space<vmem>>, vector<1x256xf32>
    tpu.vector_store %arg10[%c0_23, %c0_24], %30 {strides = array<i32>} : memref<1x256xf32, #tpu.memory_space<vmem>>, vector<1x256xf32>,
    return
  }
  func.func @transform_0(%arg0: i32) -> (i32, i32) {
    %c0_i32 = arith.constant 0 : i32
    %c0_i32_0 = arith.constant 0 : i32
    return %c0_i32, %arg0 : i32, i32
  }
  func.func @transform_1(%arg0: i32) -> (i32, i32) {
    %c0_i32 = arith.constant 0 : i32
    %c0_i32_0 = arith.constant 0 : i32
    %c0_i32_1 = arith.constant 0 : i32
    return %c0_i32, %c0_i32_0 : i32, i32
  }
  func.func @transform_2(%arg0: i32) -> (i32, i32) {
    %c0_i32 = arith.constant 0 : i32
    %c0_i32_0 = arith.constant 0 : i32
    %c0_i32_1 = arith.constant 0 : i32
    return %c0_i32, %c0_i32_0 : i32, i32
  }
  func.func @transform_3(%arg0: i32) -> (i32, i32) {
    %c0_i32 = arith.constant 0 : i32
    %c0_i32_0 = arith.constant 0 : i32
    %c0_i32_1 = arith.constant 0 : i32
    return %c0_i32, %c0_i32_0 : i32, i32
  }
  func.func @transform_4(%arg0: i32) -> (i32, i32) {
    %c0_i32 = arith.constant 0 : i32
    %c0_i32_0 = arith.constant 0 : i32
    %c0_i32_1 = arith.constant 0 : i32
    return %c0_i32, %c0_i32_0 : i32, i32
  }
  func.func @transform_5(%arg0: i32) -> (i32, i32) {
    %c0_i32 = arith.constant 0 : i32
    %c0_i32_0 = arith.constant 0 : i32
    %c0_i32_1 = arith.constant 0 : i32
    return %c0_i32, %c0_i32_0 : i32, i32
  }
  func.func @transform_6(%arg0: i32) -> (i32, i32) {
    %c0_i32 = arith.constant 0 : i32
    %c0_i32_0 = arith.constant 0 : i32
    %c0_i32_1 = arith.constant 0 : i32
    return %c0_i32, %c0_i32_0 : i32, i32
  }
  func.func @transform_7(%arg0: i32) -> (i32, i32) {
    %c0_i32 = arith.constant 0 : i32
    %c0_i32_0 = arith.constant 0 : i32
    %c0_i32_1 = arith.constant 0 : i32
    return %c0_i32, %c0_i32_0 : i32, i32
  }
  func.func @transform_8(%arg0: i32) -> (i32, i32) {
    %c0_i32 = arith.constant 0 : i32
    %c0_i32_0 = arith.constant 0 : i32
    %c0_i32_1 = arith.constant 0 : i32
    return %c0_i32, %c0_i32_0 : i32, i32
  }
  func.func @transform_9(%arg0: i32) -> (i32, i32) {
    %c0_i32 = arith.constant 0 : i32
    %c0_i32_0 = arith.constant 0 : i32
    return %c0_i32, %arg0 : i32, i32
  }
}

</mosaic_0001>

<bundles_post_ra>
// kernel: tpu_custom_call.1
= control target key start
LH: loop header
LB: loop body
LE: loop exit
PB: predicated region body
PF: predicated region fallthrough
CT: control target
= control target key end

     0   :  { %s834_s0 = inlined_call_operand.vmem [shape: f32[32,256], index: 0, kind: input, shape index: {}]   ;;  %s835_s1 = inlined_call_operand.vmem [shape: f32[32,32], index: 1, kind: input, shape index: {}]   ;;  %s836_s2 = inlined_call_operand.vmem [shape: f32[32,1], index: 2, kind: input, shape index: {}]   ;;  %s837_s3 = inlined_call_operand.vmem [shape: f32[32,32], index: 3, kind: input, shape index: {}]   ;;  %s838_s4 = inlined_call_operand.vmem [shape: f32[32,1], index: 4, kind: input, shape index: {}]   ;;  %s839_s5 = inlined_call_operand.hbm [shape: f32[32,32], index: 5, kind: input, shape index: {}]   ;;  %s840_s6 = inlined_call_operand.vmem [shape: f32[32,1], index: 6, kind: input, shape index: {}]   ;;  %s841_s7 = inlined_call_operand.vmem [shape: f32[32,1], index: 7, kind: input, shape index: {}]   ;;  %s842_s8 = inlined_call_operand.<no memory space> [shape: f32[1,1], index: 8, kind: input, shape index: {}]   ;;  %s843_s9 = inlined_call_operand.hbm [shape: f32[1,256], index: 9, kind: output, shape index: {}]  }
   0x1   :  { %v14_v0 = vstv %s842_s8 }
   0x2   :  { %15 = vst [vmem:[#allocation2] sm:$0x1] %v14_v0 }
   0x3   :  { %16 = vsyncpa [#allocation4], 0 }
   0x4   :  { %17 = vsyncpa [#allocation5], 0  ;;  %s648_s11 = smov [#allocation3]  }
   0x5   :  { %s33_s12 = sshll.u32 %s648_s11, 4  ;;  %s34_s12 = int_to_ptr.vmem [resolvable:$true] %s33_s12 }
   0x6   :  { %s612_s13 = scalar_lea.vmem %s34_s12, 512  ;;  %p617_p1 = scmp.lt.s32.totalorder %s34_s12, %s34_s12 }
   0x7   :  { %p613_p0 = scmp.ne.s32.totalorder %s34_s12, %s612_s13  ;;  %p618_p2 = scmp.lt.s32.totalorder %s612_s13, %s612_s13 }
   0x9   :  { %p619_p3 = por %p618_p2, %p617_p1 }
   0xb   :  { %p620_p4 = pnand %p619_p3, %p613_p0 }
   0xd   :  { %623 = shalt.err (!%p620_p4)
}
   0xe   :  { %s649_s14 = smov 128   ;;  %s650_s15 = smov 8  }
   0xf   :  { %39 = dma.hbm_to_vmem [thread:$0]  %s839_s5, 512, %s34_s12, [#allocation4], %s649_s14, %s649_s14, %s650_s15  }
  0x10   :  { %644 = dma.done.wait [#allocation4], 512  }
  0x11   :  { %645 = vsyncadd [#allocation4], 4294966784  ;;  %v651_v1 = vmov 0.0   ;;  %v652_v2 = vmov 0   ;;  %v56_v3 = vld [vmem:[%s834_s0 + $0x38] sm:$0xff]  ;;  %v55_v4 = vld [vmem:[%s834_s0 + $0x30] sm:$0xff] }
  0x12   :  { %174 = vmatprep.mubr.f32.mxu1 %v651_v1  ;;  %162 = vmatprep.mubr.f32.mxu0 %v651_v1  ;;  %v54_v5 = vld [vmem:[%s834_s0 + $0x28] sm:$0xff]  ;;  %v53_v6 = vld [vmem:[%s834_s0 + $0x20] sm:$0xff]  ;;  %v52_v7 = vld [vmem:[%s834_s0 + $0x18] sm:$0xff]  ;;  %vm85_vm0 = vcmask 261120  }
  0x13   :  { %598 = vset.pattern.permute.xlu0 %v652_v2  ;;  %599 = vset.pattern.permute.xlu1 %v652_v2  ;;  %v51_v8 = vld [vmem:[%s834_s0 + $0x10] sm:$0xff]  ;;  %v50_v9 = vld [vmem:[%s834_s0 + $0x8] sm:$0xff]  ;;  %v49_v10 = vld [vmem:[%s834_s0] sm:$0xff] }
  0x14   :  { %583 = vmatprep.subr.mxu1 %v56_v3  ;;  %122 = vmatprep.subr.mxu0 %v56_v3  ;;  %v59_v11 = vld [vmem:[%s835_s1 + $0x10] sm:$0xff]  ;;  %v57_v12 = vld [vmem:[%s835_s1] sm:$0xff]  ;;  %v64_v13 = vld [vmem:[%s836_s2 + $0x18] sm:$0xff] }
  0x15   :  { %587 = vmatpush1.msra.mxu1 %v55_v4  ;;  %123 = vmatpush1.msra.mxu0 %v55_v4  ;;  %v62_v14 = vld [vmem:[%s836_s2 + $0x8] sm:$0xff]  ;;  %v60_v15 = vld [vmem:[%s835_s1 + $0x18] sm:$0xff]  ;;  %v63_v17 = vld [vmem:[%s836_s2 + $0x10] sm:$0xff] }
  0x16   :  { %584 = vmatprep.subr.mxu1 %v54_v5  ;;  %124 = vmatprep.subr.mxu0 %v54_v5  ;;  %v58_v16 = vld [vmem:[%s835_s1 + $0x8] sm:$0xff]  ;;  %v61_v18 = vld [vmem:[%s836_s2] sm:$0xff]  ;;  %v202_v19 = vld [vmem:[%s838_s4 + $0x18] sm:$0xff] }
  0x17   :  { %588 = vmatpush1.msra.mxu1 %v53_v6  ;;  %125 = vmatpush1.msra.mxu0 %v53_v6  ;;  %v201_v20 = vld [vmem:[%s838_s4 + $0x10] sm:$0xff]  ;;  %v200_v21 = vld [vmem:[%s838_s4 + $0x8] sm:$0xff]  ;;  %v199_v22 = vld [vmem:[%s838_s4] sm:$0xff] }
  0x18   :  { %585 = vmatprep.subr.mxu1 %v52_v7  ;;  %126 = vmatprep.subr.mxu0 %v52_v7  ;;  %v336_v23 = vld [vmem:[%s840_s6] sm:$0xff]  ;;  %v337_v24 = vld [vmem:[%s840_s6 + $0x8] sm:$0xff]  ;;  %v338_v25 = vld [vmem:[%s840_s6 + $0x10] sm:$0xff] }
  0x19   :  { %589 = vmatpush1.msra.mxu1 %v51_v8  ;;  %127 = vmatpush1.msra.mxu0 %v51_v8  ;;  %v339_v26 = vld [vmem:[%s840_s6 + $0x18] sm:$0xff]  ;;  %v469_v27 = vld [vmem:[%s841_s7] sm:$0xff]  ;;  %v470_v28 = vld [vmem:[%s841_s7 + $0x8] sm:$0xff] }
  0x1a   :  { %586 = vmatprep.subr.mxu1 %v50_v9  ;;  %128 = vmatprep.subr.mxu0 %v50_v9  ;;  %v471_v29 = vld [vmem:[%s841_s7 + $0x10] sm:$0xff]  ;;  %v472_v30 = vld [vmem:[%s841_s7 + $0x18] sm:$0xff]  ;;  %v473_v31 = vld [vmem:[#allocation2] sm:$0x1] }
  0x1b   :  { %590 = vmatpush1.msra.mxu1 %v49_v10  ;;  %129 = vmatpush1.msra.mxu0 %v49_v10  ;;  %v195_v60 = vld [vmem:[%s837_s3] sm:$0xff]  ;;  %v196_v61 = vld [vmem:[%s837_s3 + $0x8] sm:$0xff]  ;;  %v197_v62 = vld [vmem:[%s837_s3 + $0x10] sm:$0xff] }
  0x1c   :  { %573 = vmatmul.mubr.msk.f32.vlgmr.msra.gmra.mxu1 %vm85_vm0, %v59_v11  ;;  %571 = vmatmul.mubr.msk.f32.vlgmr.msra.gmra.mxu0 %vm85_vm0, %v57_v12  ;;  %v198_v63 = vld [vmem:[%s837_s3 + $0x18] sm:$0xff]  ;;  %s654_s3 = smov [#allocation6]  }
  0x1d   :  { %180 = vmatprep.mubr.f32.mxu1 %v651_v1  ;;  %168 = vmatprep.mubr.f32.mxu0 %v651_v1  ;;  %s562_s26 = sshll.u32 %s654_s3, 4  ;;  %s563_s26 = int_to_ptr.vmem [resolvable:$true] %s562_s26 }
  0x1e   :  { %82 = vperm.xlu0 %598, %v64_v13   ;;  %72 = vperm.xlu1 %599, %v62_v14   ;;  %s624_s2 = scalar_lea.vmem %s563_s26, 32  ;;  %p629_p6 = scmp.lt.s32.totalorder %s563_s26, %s563_s26 }
  0x1f   :  { %p625_p5 = scmp.ne.s32.totalorder %s563_s26, %s624_s2  ;;  %p630_p7 = scmp.lt.s32.totalorder %s624_s2, %s624_s2 }
  0x20   :  { %574 = vmatmul.mubr.msk.f32.gmra.mxu1 %vm85_vm0, %v60_v15  ;;  %572 = vmatmul.mubr.msk.f32.gmra.mxu0 %vm85_vm0, %v58_v16 }
  0x21   :  { %299 = vmatprep.mubr.f32.mxu1 %v651_v1  ;;  %436 = vmatprep.mubr.f32.mxu0 %v651_v1  ;;  %p631_p8 = por %p630_p7, %p629_p6 }
  0x22   :  { %77 = vperm.xlu0 %598, %v63_v17   ;;  %67 = vperm.xlu1 %599, %v61_v18  }
  0x23   :  { %p632_p9 = pnand %p631_p8, %p625_p5 }
  0x26   :  { %220 = vperm.xlu0 %598, %v202_v19   ;;  %215 = vperm.xlu1 %599, %v201_v20  }
  0x2a   :  { %210 = vperm.xlu0 %598, %v200_v21   ;;  %205 = vperm.xlu1 %599, %v199_v22  }
  0x2e   :  { %342 = vperm.xlu0 %598, %v336_v23   ;;  %347 = vperm.xlu1 %599, %v337_v24  }
  0x32   :  { %352 = vperm.xlu0 %598, %v338_v25   ;;  %357 = vperm.xlu1 %599, %v339_v26  }
  0x36   :  { %476 = vperm.xlu0 %598, %v469_v27   ;;  %481 = vperm.xlu1 %599, %v470_v28  }
  0x3a   :  { %486 = vperm.xlu0 %598, %v471_v29   ;;  %491 = vperm.xlu1 %599, %v472_v30   ;;  %v332_v29 = vld [vmem:[#allocation3] sm:$0xff]  ;;  %v333_v30 = vld [vmem:[#allocation3 + $0x8] sm:$0xff] }
  0x3e   :  { %522 = vperm.xlu0 %598, %v473_v31   ;;  %v334_v31 = vld [vmem:[#allocation3 + $0x10] sm:$0xff] }
  0x99   :  { %v83_v32 = vpop.permute.xlu0 %82  ;;  %v73_v37 = vpop.permute.xlu1 %72 }
  0x9d   :  { %v78_v40 = vpop.permute.xlu0 %77  ;;  %v68_v49 = vpop.permute.xlu1 %67 }
  0xa1   :  { %v221_v6 = vpop.permute.xlu0 %220  ;;  %v216_v8 = vpop.permute.xlu1 %215 }
  0xa5   :  { %v211_v14 = vpop.permute.xlu0 %210  ;;  %v206_v18 = vpop.permute.xlu1 %205 }
  0xdc   :  { %v176_v33 = vpop.f32.mrf.mxu1  ;;  %v164_v34 = vpop.f32.mrf.mxu0 }
  0xdd   :  { %v177_v46 = vadd.f32 %v176_v33, %v78_v40  ;;  %v165_v55 = vadd.f32 %v164_v34, %v68_v49  ;;  %v343_v33 = vpop.permute.xlu0 %342  ;;  %v348_v34 = vpop.permute.xlu1 %347 }
  0xde   :  { %v178_v35 = vpop.f32.mrf.mxu1  ;;  %v166_v36 = vpop.f32.mrf.mxu0 }
  0xdf   :  { %v179_v44 = vadd.f32 %v178_v35, %v78_v40  ;;  %v167_v53 = vadd.f32 %v166_v36, %v68_v49  ;;  %v191_v54 = vmax.f32 %v177_v46, 0.0  ;;  %v187_v59 = vmax.f32 %v165_v55, 0.0 }
  0xe0   :  { %v182_v38 = vpop.f32.mrf.mxu1  ;;  %v170_v39 = vpop.f32.mrf.mxu0 }
  0xe1   :  { %v183_v41 = vadd.f32 %v182_v38, %v83_v32  ;;  %v171_v51 = vadd.f32 %v170_v39, %v73_v37  ;;  %v192_v52 = vmax.f32 %v179_v44, 0.0  ;;  %v188_v58 = vmax.f32 %v167_v53, 0.0  ;;  %v353_v35 = vpop.permute.xlu0 %352  ;;  %v358_v38 = vpop.permute.xlu1 %357 }
  0xe2   :  { %v184_v42 = vpop.f32.mrf.mxu1  ;;  %v172_v43 = vpop.f32.mrf.mxu0 }
  0xe3   :  { %v185_v45 = vadd.f32 %v184_v42, %v83_v32  ;;  %v173_v48 = vadd.f32 %v172_v43, %v73_v37  ;;  %v193_v50 = vmax.f32 %v183_v41, 0.0  ;;  %v189_v57 = vmax.f32 %v171_v51, 0.0  ;;  %v335_v32 = vld [vmem:[#allocation3 + $0x18] sm:$0xff] }
  0xe5   :  { %v194_v47 = vmax.f32 %v185_v45, 0.0  ;;  %v190_v56 = vmax.f32 %v173_v48, 0.0  ;;  %v477_v42 = vpop.permute.xlu0 %476 }
  0xe7   :  { %259 = vmatprep.subr.mxu1 %v194_v47 }
  0xe8   :  { %260 = vmatpush1.msra.mxu1 %v193_v50  ;;  %v482_v50 = vpop.permute.xlu1 %481 }
  0xe9   :  { %261 = vmatprep.subr.mxu1 %v192_v52 }
  0xea   :  { %262 = vmatpush1.msra.mxu1 %v191_v54 }
  0xeb   :  { %263 = vmatprep.subr.mxu1 %v190_v56  ;;  %v487_v56 = vpop.permute.xlu0 %486 }
  0xec   :  { %264 = vmatpush1.msra.mxu1 %v189_v57 }
  0xed   :  { %265 = vmatprep.subr.mxu1 %v188_v58 }
  0xee   :  { %266 = vmatpush1.msra.mxu1 %v187_v59 }
  0xef   :  { %575 = vmatmul.mubr.msk.f32.vlgmr.msra.gmra.mxu1 %vm85_vm0, %v195_v60 }
  0xf0   :  { %305 = vmatprep.mubr.f32.mxu1 %v651_v1 }
  0xf3   :  { %576 = vmatmul.mubr.msk.f32.gmra.mxu1 %vm85_vm0, %v196_v61 }
  0xf4   :  { %311 = vmatprep.mubr.f32.mxu1 %v651_v1 }
  0xf7   :  { %577 = vmatmul.mubr.msk.f32.gmra.mxu1 %vm85_vm0, %v197_v62 }
  0xf8   :  { %317 = vmatprep.mubr.f32.mxu1 %v651_v1 }
  0xfb   :  { %578 = vmatmul.mubr.msk.f32.gmra.mxu1 %vm85_vm0, %v198_v63 }
 0x1af   :  { %v301_v0 = vpop.f32.mrf.mxu1 }
 0x1b0   :  { %v302_v23 = vadd.f32 %v301_v0, %v206_v18 }
 0x1b1   :  { %v303_v2 = vpop.f32.mrf.mxu1 }
 0x1b2   :  { %v304_v21 = vadd.f32 %v303_v2, %v206_v18  ;;  %v324_v28 = vmax.f32 %v302_v23, 0.0 }
 0x1b3   :  { %v307_v3 = vpop.f32.mrf.mxu1 }
 0x1b4   :  { %v308_v19 = vadd.f32 %v307_v3, %v211_v14  ;;  %v325_v27 = vmax.f32 %v304_v21, 0.0 }
 0x1b5   :  { %v309_v4 = vpop.f32.mrf.mxu1 }
 0x1b6   :  { %v310_v16 = vadd.f32 %v309_v4, %v211_v14  ;;  %v326_v26 = vmax.f32 %v308_v19, 0.0 }
 0x1b7   :  { %v313_v5 = vpop.f32.mrf.mxu1 }
 0x1b8   :  { %v314_v15 = vadd.f32 %v313_v5, %v216_v8  ;;  %v327_v25 = vmax.f32 %v310_v16, 0.0 }
 0x1b9   :  { %v315_v7 = vpop.f32.mrf.mxu1 }
 0x1ba   :  { %v316_v12 = vadd.f32 %v315_v7, %v216_v8  ;;  %v328_v24 = vmax.f32 %v314_v15, 0.0 }
 0x1bb   :  { %v319_v9 = vpop.f32.mrf.mxu1 }
 0x1bc   :  { %v320_v10 = vadd.f32 %v319_v9, %v221_v6  ;;  %v329_v22 = vmax.f32 %v316_v12, 0.0 }
 0x1bd   :  { %v321_v11 = vpop.f32.mrf.mxu1 }
 0x1be   :  { %v322_v13 = vadd.f32 %v321_v11, %v221_v6  ;;  %v330_v20 = vmax.f32 %v320_v10, 0.0  ;;  %v492_v6 = vpop.permute.xlu1 %491  ;;  %v525_v11 = vlaneseq }
 0x1c0   :  { %v331_v17 = vmax.f32 %v322_v13, 0.0  ;;  %vm553_vm1 = vcmp.lt.s32.totalorder %v525_v11, 256 }
 0x1c2   :  { %396 = vmatprep.subr.mxu0 %v331_v17  ;;  %v526_v17 = vshrl.u32 %v525_v11, 7 }
 0x1c3   :  { %397 = vmatpush1.msra.mxu0 %v330_v20 }
 0x1c4   :  { %398 = vmatprep.subr.mxu0 %v329_v22  ;;  %v527_v22 = vsub.s32 0, %v526_v17 }
 0x1c5   :  { %399 = vmatpush1.msra.mxu0 %v328_v24 }
 0x1c6   :  { %400 = vmatprep.subr.mxu0 %v327_v25  ;;  %v523_v25 = vpop.permute.xlu0 %522 }
 0x1c7   :  { %401 = vmatpush1.msra.mxu0 %v326_v26 }
 0x1c8   :  { %402 = vmatprep.subr.mxu0 %v325_v27 }
 0x1c9   :  { %403 = vmatpush1.msra.mxu0 %v324_v28  ;;  %v528_v28 = vrot.slane %v523_v25, %v527_v22 }
 0x1ca   :  { %579 = vmatmul.mubr.msk.f32.vlgmr.msra.gmra.mxu0 %vm85_vm0, %v332_v29 }
 0x1cb   :  { %442 = vmatprep.mubr.f32.mxu0 %v651_v1 }
 0x1ce   :  { %580 = vmatmul.mubr.msk.f32.gmra.mxu0 %vm85_vm0, %v333_v30 }
 0x1cf   :  { %448 = vmatprep.mubr.f32.mxu0 %v651_v1 }
 0x1d2   :  { %581 = vmatmul.mubr.msk.f32.gmra.mxu0 %vm85_vm0, %v334_v31 }
 0x1d3   :  { %454 = vmatprep.mubr.f32.mxu0 %v651_v1 }
 0x1d6   :  { %582 = vmatmul.mubr.msk.f32.gmra.mxu0 %vm85_vm0, %v335_v32 }
 0x28a   :  { %v438_v36 = vpop.f32.mrf.mxu0 }
 0x28b   :  { %v439_v39 = vadd.f32 %v438_v36, %v343_v33 }
 0x28c   :  { %v440_v37 = vpop.f32.mrf.mxu0 }
 0x28d   :  { %v441_v43 = vadd.f32 %v440_v37, %v343_v33  ;;  %v461_v47 = vmax.f32 %v439_v39, 0.0 }
 0x28e   :  { %v444_v40 = vpop.f32.mrf.mxu0 }
 0x28f   :  { %v445_v41 = vadd.f32 %v444_v40, %v348_v34  ;;  %v462_v51 = vmax.f32 %v441_v43, 0.0  ;;  %v494_v57 = vmul.f32 %v477_v42, %v461_v47 }
 0x290   :  { %v446_v44 = vpop.f32.mrf.mxu0 }
 0x291   :  { %v463_v45 = vmax.f32 %v445_v41, 0.0  ;;  %v447_v46 = vadd.f32 %v446_v44, %v348_v34  ;;  %v495_v63 = vmul.f32 %v477_v42, %v462_v51  ;;  %v653_v34 = vmov 1966171168  }
 0x292   :  { %v450_v48 = vpop.f32.mrf.mxu0 }
 0x293   :  { %v464_v1 = vmax.f32 %v447_v46, 0.0  ;;  %v451_v49 = vadd.f32 %v450_v48, %v353_v35  ;;  %v496_v53 = vmul.f32 %v482_v50, %v463_v45 }
 0x294   :  { %v452_v52 = vpop.f32.mrf.mxu0 }
 0x295   :  { %v465_v54 = vmax.f32 %v451_v49, 0.0  ;;  %v453_v55 = vadd.f32 %v452_v52, %v353_v35  ;;  %v497_v59 = vmul.f32 %v482_v50, %v464_v1  ;;  %v502_v2 = vadd.f32 %v496_v53, %v494_v57 }
 0x296   :  { %v456_v58 = vpop.f32.mrf.mxu0  ;;  %v537_v35 = vunpack.c.l.s4 %v653_v34 }
 0x297   :  { %v498_v60 = vmul.f32 %v487_v56, %v465_v54  ;;  %v466_v61 = vmax.f32 %v453_v55, 0.0  ;;  %v457_v62 = vadd.f32 %v456_v58, %v358_v38  ;;  %v511_v7 = vadd.f32 %v497_v59, %v495_v63 }
 0x298   :  { %v458_v0 = vpop.f32.mrf.mxu0  ;;  %v538_v36 = vunpack.c.0.s8 %v537_v35 }
 0x299   :  { %v499_v3 = vmul.f32 %v487_v56, %v466_v61  ;;  %v467_v4 = vmax.f32 %v457_v62, 0.0  ;;  %v459_v5 = vadd.f32 %v458_v0, %v358_v38  ;;  %v503_v8 = vadd.f32 %v502_v2, %v498_v60 }
 0x29a   :  { %v541_v38 = vsub.s32 %v538_v36, %v526_v17 }
 0x29b   :  { %v500_v9 = vmul.f32 %v492_v6, %v467_v4  ;;  %v468_v10 = vmax.f32 %v459_v5, 0.0  ;;  %v512_v12 = vadd.f32 %v511_v7, %v499_v3 }
 0x29d   :  { %v504_v13 = vadd.f32 %v503_v8, %v500_v9  ;;  %v501_v14 = vmul.f32 %v492_v6, %v468_v10 }
 0x29f   :  { %v505_v15 = vrot.slane %v504_v13, 4  ;;  %v513_v16 = vadd.f32 %v512_v12, %v501_v14 }
 0x2a1   :  { %v506_v18 = vadd.f32 %v505_v15, %v504_v13  ;;  %v514_v19 = vrot.slane %v513_v16, 4 }
 0x2a3   :  { %v507_v20 = vrot.slane %v506_v18, 2  ;;  %v515_v21 = vadd.f32 %v514_v19, %v513_v16 }
 0x2a5   :  { %v508_v23 = vadd.f32 %v507_v20, %v506_v18  ;;  %v516_v24 = vrot.slane %v515_v21, 2 }
 0x2a7   :  { %v509_v26 = vrot.slane %v508_v23, 1  ;;  %v517_v27 = vadd.f32 %v516_v24, %v515_v21 }
 0x2a9   :  { %v510_v29 = vadd.f32 %v509_v26, %v508_v23  ;;  %v518_v30 = vrot.slane %v517_v27, 1 }
 0x2ab   :  { %v529_v31 = vadd.f32 %v528_v28, %v510_v29  ;;  %v519_v32 = vadd.f32 %v518_v30, %v517_v27 }
 0x2ad   :  { %v530_v33 = vadd.f32 %v528_v28, %v519_v32  ;;  %600 = vtanh.f32 %v529_v31 }
 0x2af   :  { %602 = vtanh.f32 %v530_v33 }
 0x2ba   :  { %v601_v37 = vpop.eup %600 }
 0x2bc   :  { %v603_v39 = vpop.eup %602 }
 0x2bd   :  { %v535_v40 = vcombine.low %v601_v37, %v603_v39 }
 0x2bf   :  { %v542_v41 = vrot.slane %v535_v40, %v541_v38 }
 0x2c1   :  { %v549_v42 = vrot.slane %v542_v41, %v541_v38 }
 0x2c3   :  { %555 = vst.msk [vmem:[#allocation6] sm:$0x3] %vm553_vm1, %v549_v42 }
 0x2c4   :  { %635 = shalt.err (!%p632_p9)
}
 0x2c5   :  { %565 = dma.vmem_to_hbm [thread:$0]  %s563_s26, 32, %s843_s9, [#allocation5]  }
 0x2c6   :  { %646 = dma.done.wait [#allocation5], 32  }
 0x2c7   :  { %647 = vsyncadd [#allocation5], 4294967264 }
 0x2c8   :  { %569 = vsyncpa [#allocation4], 1 }
 0x2c9   :  { %570 = vsyncpa [#allocation5], 1 }

</bundles_post_ra>
